<compile_context>
chip_gen: v6e
topology: v6e:2x2x1
jax: 0.10.0
libtpu: 0.0.40
codegen_flags: <defaults>
</compile_context>

<pallas_src>
import math

import jax
import jax.numpy as jnp
import numpy as np
from jax import lax
from jax.experimental import pallas as pl
from jax.experimental.pallas import tpu as pltpu

_LANE = 128
_SUBLANE = 8
_COLLAPSE_BUDGET = 40 * 1024 * 1024   # VMEM working-set budget (headroom on v7x 64 MiB)


# ----------------------------------------------------------------------------
# Small helpers
# ----------------------------------------------------------------------------
def _round_up(v, m):
    return ((v + m - 1) // m) * m


def _largest_tile_divisor(dim, upper):
    """Largest multiple of 128 dividing `dim` (a multiple of 128) and <= upper."""
    t = max(_LANE, (min(upper, dim) // _LANE) * _LANE)
    while dim % t:
        t -= _LANE
    return t


def _pad2d(a, rows, cols):
    pr, pc = rows - a.shape[0], cols - a.shape[1]
    if pr == 0 and pc == 0:
        return a
    return jnp.pad(a, ((0, pr), (0, pc)))


def _num_tensorcores():
    try:
        kind = jax.devices()[0].device_kind.lower()
    except Exception:
        return 1
    return 2 if "v7" in kind else 1


def _dot_nt(x, w):
    """x:(B,K) . w:(N,K) -> (B,N); contract last dims (native F.linear layout,
    no transpose of the effective-weight tile)."""
    return lax.dot_general(x, w, dimension_numbers=(((1,), (1,)), ((), ())),
                           preferred_element_type=jnp.float32)


# ----------------------------------------------------------------------------
# Collapsed-K kernels (1-D grid over out-tiles, no accumulator scratch)
# ----------------------------------------------------------------------------
def _eval_kernel_1d(x_ref, wmu_ref, bmu_ref, o_ref):
    x = x_ref[...]
    w = wmu_ref[...].astype(x.dtype)
    o_ref[...] = (_dot_nt(x, w) + bmu_ref[...]).astype(o_ref.dtype)


def _train_fact_kernel_1d(x_ref, wmu_ref, wsig_ref, eout_ref, ein_ref,
                          bmu_ref, bsig_ref, beps_ref, o_ref):
    x = x_ref[...]
    # Rebuild rank-1 factorised noise on the VPU (no dense weight_epsilon DMA).
    weps = eout_ref[...] * ein_ref[...]                       # (tn,1)*(1,K)->(tn,K) f32
    # Combine in f32 (v5e-friendly); weights may be stored bf16 in HBM.
    w = wmu_ref[...].astype(jnp.float32) + wsig_ref[...].astype(jnp.float32) * weps
    bias = bmu_ref[...] + bsig_ref[...] * beps_ref[...]
    o_ref[...] = (_dot_nt(x, w.astype(x.dtype)) + bias).astype(o_ref.dtype)


def _train_dense_kernel_1d(x_ref, wmu_ref, wsig_ref, weps_ref,
                           bmu_ref, bsig_ref, beps_ref, o_ref):
    x = x_ref[...]
    w = (wmu_ref[...].astype(jnp.float32)
         + wsig_ref[...].astype(jnp.float32) * weps_ref[...].astype(jnp.float32))
    bias = bmu_ref[...] + bsig_ref[...] * beps_ref[...]
    o_ref[...] = (_dot_nt(x, w.astype(x.dtype)) + bias).astype(o_ref.dtype)


# ----------------------------------------------------------------------------
# 2-D fallback kernels (contraction axis survives; f32 accumulator scratch)
# ----------------------------------------------------------------------------
def _accum_step(acc_ref, o_ref, x, w_f32, bias_fn):
    k = pl.program_id(1)
    partial = _dot_nt(x, w_f32.astype(x.dtype))

    @pl.when(k == 0)
    def _():
        acc_ref[...] = partial              # direct write: no zero-fill / extra load

    @pl.when(k > 0)
    def _():
        acc_ref[...] += partial

    @pl.when(k == pl.num_programs(1) - 1)
    def _():
        o_ref[...] = (acc_ref[...] + bias_fn()).astype(o_ref.dtype)


def _eval_kernel_2d(x_ref, wmu_ref, bmu_ref, o_ref, acc_ref):
    _accum_step(acc_ref, o_ref, x_ref[...], wmu_ref[...], lambda: bmu_ref[...])


def _train_fact_kernel_2d(x_ref, wmu_ref, wsig_ref, eout_ref, ein_ref,
                          bmu_ref, bsig_ref, beps_ref, o_ref, acc_ref):
    weps = eout_ref[...] * ein_ref[...]
    w = wmu_ref[...].astype(jnp.float32) + wsig_ref[...].astype(jnp.float32) * weps
    _accum_step(acc_ref, o_ref, x_ref[...], w,
                lambda: bmu_ref[...] + bsig_ref[...] * beps_ref[...])


def _train_dense_kernel_2d(x_ref, wmu_ref, wsig_ref, weps_ref,
                           bmu_ref, bsig_ref, beps_ref, o_ref, acc_ref):
    w = (wmu_ref[...].astype(jnp.float32)
         + wsig_ref[...].astype(jnp.float32) * weps_ref[...].astype(jnp.float32))
    _accum_step(acc_ref, o_ref, x_ref[...], w,
                lambda: bmu_ref[...] + bsig_ref[...] * beps_ref[...])


# ----------------------------------------------------------------------------
# Wrapper
# ----------------------------------------------------------------------------
def noisy_linear(x, weight_mu, weight_sigma, weight_epsilon,
                 bias_mu, bias_sigma, bias_epsilon, *,
                 epsilon_in=None, epsilon_out=None, training=True,
                 block_n=256, block_k=512, weight_dtype=jnp.bfloat16,
                 collapse_k=None, vmem_limit_bytes=None):
    """Pallas TPU implementation of NoisyLinear.forward.

    x:        (B, in_features)
    weight_*: (out_features, in_features)
    bias_*:   (out_features,)
    epsilon_in / epsilon_out (optional): rank-1 factors of weight_epsilon; if
        given (factorised NoisyLinear), the dense weight_epsilon is never read.
    weight_dtype: storage/DMA dtype for the big (out, in) tensors (bf16 halves
        HBM traffic; pass jnp.float32 for exact-parity with the PyTorch f32 op).
    """
    B, K = x.shape
    N = weight_mu.shape[0]
    out_dtype = x.dtype
    xbytes = jnp.dtype(x.dtype).itemsize
    wbytes = jnp.dtype(weight_dtype).itemsize
    obytes = jnp.dtype(out_dtype).itemsize

    factorised = training and (epsilon_in is not None) and (epsilon_out is not None)
    n_wstreams = 1 if not training else (2 if factorised else 3)

    # ---- tile / padding selection: pad dims UP to the tile, don't shrink tile.
    B_pad = _round_up(max(B, 1), _SUBLANE)
    K128 = _round_up(K, _LANE)
    tn = min(_round_up(block_n, _LANE), _round_up(N, _LANE))
    N_pad = _round_up(N, tn)
    # v7x (2 TensorCores): keep >= 2 out-tiles so the 'parallel' axis is sharded.
    if _num_tensorcores() >= 2 and N_pad // tn < 2 and N_pad >= 2 * _LANE:
        tn = _largest_tile_divisor(N_pad, N_pad // 2)

    def footprint(tn_, tk_, k_steps):
        f = 2 * n_wstreams * tn_ * tk_ * wbytes      # double-buffered weight tiles
        f += 2 * B_pad * tk_ * xbytes                # activation block
        f += 2 * B_pad * tn_ * obytes                # output block
        if k_steps > 1:
            f += B_pad * tn_ * 4                     # f32 accumulator scratch
        f += 8 * (tn_ + tk_) * 4                     # bias / epsilon rows (generous)
        return f

    if collapse_k is None:
        collapse_k = footprint(tn, K128, 1) <= _COLLAPSE_BUDGET

    if collapse_k:
        tk, K_pad = K128, K128
    else:
        tk = min(_round_up(block_k, _LANE), K128)
        while tk > _LANE and footprint(tn, tk, 2) > _COLLAPSE_BUDGET:
            tk -= _LANE
        K_pad = _round_up(K, tk)

    fp = footprint(tn, tk, 1 if collapse_k else 2)
    if vmem_limit_bytes is None:
        vmem_limit_bytes = int(min(max(int(fp * 1.3) + (2 << 20), 16 << 20), 64 << 20))

    # ---- host-side padding & dtype casts (bf16 storage of the big tensors).
    x_p = _pad2d(x, B_pad, K_pad)
    wmu_p = _pad2d(weight_mu.astype(weight_dtype), N_pad, K_pad)
    bmu_p = _pad2d(bias_mu.astype(jnp.float32).reshape(1, N), 1, N_pad)

    if collapse_k:
        grid = (N_pad // tn,)
        dims = ("parallel",)
        x_spec = pl.BlockSpec((B_pad, K_pad), lambda j: (0, 0))   # VMEM-resident x
        w_spec = pl.BlockSpec((tn, K_pad), lambda j: (j, 0))
        brow_spec = pl.BlockSpec((1, tn), lambda j: (0, j))
        eout_spec = pl.BlockSpec((tn, 1), lambda j: (j, 0))
        ein_spec = pl.BlockSpec((1, K_pad), lambda j: (0, 0))
        out_spec = pl.BlockSpec((B_pad, tn), lambda j: (0, j))
        scratch = []
        kern_eval, kern_fact, kern_dense = (_eval_kernel_1d,
                                            _train_fact_kernel_1d,
                                            _train_dense_kernel_1d)
    else:
        grid = (N_pad // tn, K_pad // tk)
        dims = ("parallel", "arbitrary")
        x_spec = pl.BlockSpec((B_pad, tk), lambda j, k: (0, k))
        w_spec = pl.BlockSpec((tn, tk), lambda j, k: (j, k))
        brow_spec = pl.BlockSpec((1, tn), lambda j, k: (0, j))
        eout_spec = pl.BlockSpec((tn, 1), lambda j, k: (j, 0))
        ein_spec = pl.BlockSpec((1, tk), lambda j, k: (0, k))
        out_spec = pl.BlockSpec((B_pad, tn), lambda j, k: (0, j))
        scratch = [pltpu.VMEM((B_pad, tn), jnp.float32)]
        kern_eval, kern_fact, kern_dense = (_eval_kernel_2d,
                                            _train_fact_kernel_2d,
                                            _train_dense_kernel_2d)

    if not training:
        # Eval path: only mu tensors are listed -> only mu bytes are DMA'd.
        kernel = kern_eval
        inputs = (x_p, wmu_p, bmu_p)
        in_specs = [x_spec, w_spec, brow_spec]
    else:
        wsig_p = _pad2d(weight_sigma.astype(weight_dtype), N_pad, K_pad)
        bsig_p = _pad2d(bias_sigma.astype(jnp.float32).reshape(1, N), 1, N_pad)
        beps_p = _pad2d(bias_epsilon.astype(jnp.float32).reshape(1, N), 1, N_pad)
        if factorised:
            eout_p = _pad2d(epsilon_out.astype(jnp.float32).reshape(N, 1), N_pad, 1)
            ein_p = _pad2d(epsilon_in.astype(jnp.float32).reshape(1, K), 1, K_pad)
            kernel = kern_fact
            inputs = (x_p, wmu_p, wsig_p, eout_p, ein_p, bmu_p, bsig_p, beps_p)
            in_specs = [x_spec, w_spec, w_spec, eout_spec, ein_spec,
                        brow_spec, brow_spec, brow_spec]
        else:
            weps_p = _pad2d(weight_epsilon.astype(weight_dtype), N_pad, K_pad)
            kernel = kern_dense
            inputs = (x_p, wmu_p, wsig_p, weps_p, bmu_p, bsig_p, beps_p)
            in_specs = [x_spec, w_spec, w_spec, w_spec,
                        brow_spec, brow_spec, brow_spec]

    in_bytes = sum(int(np.prod(a.shape)) * jnp.dtype(a.dtype).itemsize
                   for a in inputs)
    cost = pl.CostEstimate(flops=2 * B_pad * N_pad * K_pad, transcendentals=0,
                           bytes_accessed=in_bytes + B_pad * N_pad * obytes)

    out = pl.pallas_call(
        kernel,
        out_shape=jax.ShapeDtypeStruct((B_pad, N_pad), out_dtype),
        grid_spec=pltpu.PrefetchScalarGridSpec(
            num_scalar_prefetch=0,
            grid=grid,
            in_specs=in_specs,
            out_specs=out_spec,
            scratch_shapes=scratch),
        compiler_params=pltpu.CompilerParams(
            dimension_semantics=dims,
            vmem_limit_bytes=vmem_limit_bytes),
        cost_estimate=cost,
    )(*inputs)

    return out[:B, :N]


# ----------------------------------------------------------------------------
# Parameter / noise init (deterministic re-implementation of the PyTorch init)
# ----------------------------------------------------------------------------
def _scale_noise(key, size):
    x = jax.random.normal(key, (size,), dtype=jnp.float32)
    return jnp.sign(x) * jnp.sqrt(jnp.abs(x))


def init_noisy_linear_params(key, in_features, out_features, sigma_init=0.017):
    k_wmu, k_bmu, k_ein, k_eout = jax.random.split(key, 4)
    mu_range = 1.0 / math.sqrt(in_features)
    weight_mu = jax.random.uniform(k_wmu, (out_features, in_features),
                                   minval=-mu_range, maxval=mu_range,
                                   dtype=jnp.float32)
    weight_sigma = jnp.full((out_features, in_features), sigma_init, jnp.float32)
    bias_mu = jax.random.uniform(k_bmu, (out_features,),
                                 minval=-mu_range, maxval=mu_range,
                                 dtype=jnp.float32)
    bias_sigma = jnp.full((out_features,), sigma_init, jnp.float32)
    epsilon_in = _scale_noise(k_ein, in_features)
    epsilon_out = _scale_noise(k_eout, out_features)
    weight_epsilon = jnp.outer(epsilon_out, epsilon_in)   # epsilon_out.ger(epsilon_in)
    bias_epsilon = epsilon_out
    return dict(weight_mu=weight_mu, weight_sigma=weight_sigma,
                weight_epsilon=weight_epsilon, bias_mu=bias_mu,
                bias_sigma=bias_sigma, bias_epsilon=bias_epsilon,
                epsilon_in=epsilon_in, epsilon_out=epsilon_out)


if __name__ == "__main__":
    def ref_forward(x, p, training):
        if training:
            w = p["weight_mu"] + p["weight_sigma"] * p["weight_epsilon"]
            b = p["bias_mu"] + p["bias_sigma"] * p["bias_epsilon"]
        else:
            w, b = p["weight_mu"], p["bias_mu"]
        return np.asarray(x) @ np.asarray(w).T + np.asarray(b)

    cases = [
        # (batch, in_f, out_f, extra kwargs)
        (8, 32, 64, {}),                                       # tiny, single tile, collapsed K
        (6, 320, 192, dict(block_n=128)),                      # multi out-tile, tile-aligned pad
        (8, 256, 256, dict(block_n=128, block_k=128,
                           collapse_k=False)),                 # exercise 2-D k-accumulation path
    ]
    key = jax.random.PRNGKey(0)
    for batch, in_f, out_f, kw in cases:
        key, k_x, k_p = jax.random.split(key, 3)
        p = init_noisy_linear_params(k_p, in_f, out_f)
        x = jax.random.normal(k_x, (batch, in_f), dtype=jnp.float32)

        common = (x, p["weight_mu"], p["weight_sigma"], p["weight_epsilon"],
                  p["bias_mu"], p["bias_sigma"], p["bias_epsilon"])
        y_train_ref = ref_forward(x, p, training=True)
        y_eval_ref = ref_forward(x, p, training=False)

        # Training, factorised-noise fast path, bf16 weight storage (default).
        y_fact = jax.block_until_ready(noisy_linear(
            *common, epsilon_in=p["epsilon_in"], epsilon_out=p["epsilon_out"],
            training=True, **kw))
        np.testing.assert_allclose(np.asarray(y_fact), y_train_ref,
                                   rtol=2e-2, atol=2e-2)

        # Training, dense-epsilon fallback, bf16 weight storage.
        y_dense = jax.block_until_ready(noisy_linear(*common, training=True, **kw))
        np.testing.assert_allclose(np.asarray(y_dense), y_train_ref,
                                   rtol=2e-2, atol=2e-2)

        # Eval mode (only mu tensors DMA'd), bf16 weight storage.
        y_eval = jax.block_until_ready(noisy_linear(*common, training=False, **kw))
        np.testing.assert_allclose(np.asarray(y_eval), y_eval_ref,
                                   rtol=2e-2, atol=2e-2)

        # Exact-parity check with f32 weight storage (factorised path).
        y_f32 = jax.block_until_ready(noisy_linear(
            *common, epsilon_in=p["epsilon_in"], epsilon_out=p["epsilon_out"],
            training=True, weight_dtype=jnp.float32, **kw))
        np.testing.assert_allclose(np.asarray(y_f32), y_train_ref,
                                   rtol=1e-4, atol=1e-4)

    print("KERNEL_OK")
</pallas_src>

<mosaic_0001>
module attributes {stable_mosaic.version = 11 : i64} {
  func.func @_train_fact_kernel_1d(%arg0: i32, %arg1: memref<8x128xf32, #tpu.memory_space<vmem>>, %arg2: memref<128x128xbf16, #tpu.memory_space<vmem>>, %arg3: memref<128x128xbf16, #tpu.memory_space<vmem>>, %arg4: memref<128x1xf32, #tpu.memory_space<vmem>>, %arg5: memref<1x128xf32, #tpu.memory_space<vmem>>, %arg6: memref<1x128xf32, #tpu.memory_space<vmem>>, %arg7: memref<1x128xf32, #tpu.memory_space<vmem>>, %arg8: memref<1x128xf32, #tpu.memory_space<vmem>>, %arg9: memref<8x128xf32, #tpu.memory_space<vmem>>) attributes {dimension_semantics = [#tpu.dimension_semantics<parallel>], iteration_bounds = array<i64: 1>, scalar_prefetch = 0 : i64, scratch_operands = 0 : i64, tpu.core_type = #tpu.core_type<tc>, window_params = [{pipeline_mode = #tpu.pipeline_mode<synchronous>, transform_indices = @transform_0, window_bounds = array<i64: 8, 128>}, {transform_indices = @transform_1, window_bounds = array<i64: 128, 128>}, {transform_indices = @transform_2, window_bounds = array<i64: 128, 128>}, {transform_indices = @transform_3, window_bounds = array<i64: 128, 1>}, {pipeline_mode = #tpu.pipeline_mode<synchronous>, transform_indices = @transform_4, window_bounds = array<i64: 1, 128>}, {transform_indices = @transform_5, window_bounds = array<i64: 1, 128>}, {transform_indices = @transform_6, window_bounds = array<i64: 1, 128>}, {transform_indices = @transform_7, window_bounds = array<i64: 1, 128>}, {transform_indices = @transform_8, window_bounds = array<i64: 8, 128>}]} {
    %c0 = arith.constant 0 : index
    %c0_0 = arith.constant 0 : index
    %0 = vector.load %arg1[%c0, %c0_0] : memref<8x128xf32, #tpu.memory_space<vmem>>, vector<8x128xf32>
    %c0_1 = arith.constant 0 : index
    %c0_2 = arith.constant 0 : index
    %1 = vector.load %arg4[%c0_1, %c0_2] : memref<128x1xf32, #tpu.memory_space<vmem>>, vector<128x1xf32>
    %c0_3 = arith.constant 0 : index
    %c0_4 = arith.constant 0 : index
    %2 = vector.load %arg5[%c0_3, %c0_4] : memref<1x128xf32, #tpu.memory_space<vmem>>, vector<1x128xf32>
    %3 = vector.broadcast %1 : vector<128x1xf32> to vector<128x128xf32>
    %4 = vector.broadcast %2 : vector<1x128xf32> to vector<128x128xf32>
    %5 = arith.mulf %3, %4 : vector<128x128xf32>
    %c0_5 = arith.constant 0 : index
    %c0_6 = arith.constant 0 : index
    %6 = vector.load %arg2[%c0_5, %c0_6] : memref<128x128xbf16, #tpu.memory_space<vmem>>, vector<128x128xbf16>
    %7 = arith.extf %6 : vector<128x128xbf16> to vector<128x128xf32>
    %c0_7 = arith.constant 0 : index
    %c0_8 = arith.constant 0 : index
    %8 = vector.load %arg3[%c0_7, %c0_8] : memref<128x128xbf16, #tpu.memory_space<vmem>>, vector<128x128xbf16>
    %9 = arith.extf %8 : vector<128x128xbf16> to vector<128x128xf32>
    %10 = arith.mulf %9, %5 : vector<128x128xf32>
    %11 = arith.addf %7, %10 : vector<128x128xf32>
    %c0_9 = arith.constant 0 : index
    %c0_10 = arith.constant 0 : index
    %12 = vector.load %arg6[%c0_9, %c0_10] : memref<1x128xf32, #tpu.memory_space<vmem>>, vector<1x128xf32>
    %c0_11 = arith.constant 0 : index
    %c0_12 = arith.constant 0 : index
    %13 = vector.load %arg7[%c0_11, %c0_12] : memref<1x128xf32, #tpu.memory_space<vmem>>, vector<1x128xf32>
    %c0_13 = arith.constant 0 : index
    %c0_14 = arith.constant 0 : index
    %14 = vector.load %arg8[%c0_13, %c0_14] : memref<1x128xf32, #tpu.memory_space<vmem>>, vector<1x128xf32>
    %15 = arith.mulf %13, %14 : vector<1x128xf32>
    %16 = arith.addf %12, %15 : vector<1x128xf32>
    %cst = arith.constant dense<0.000000e+00> : vector<8x128xf32>
    %17 = tpu.matmul %0, %11, %cst {dimension_numbers = #tpu.dot_dimension_numbers<[1], [1], [0], [0], [0, 0, 1, 0], [], []>} : vector<8x128xf32>, vector<128x128xf32>, vector<8x128xf32> -> vector<8x128xf32>
    %18 = vector.broadcast %16 : vector<1x128xf32> to vector<8x128xf32>
    %19 = arith.addf %17, %18 : vector<8x128xf32>
    %c0_15 = arith.constant 0 : index
    %c0_16 = arith.constant 0 : index
    %20 = vector.load %arg9[%c0_15, %c0_16] : memref<8x128xf32, #tpu.memory_space<vmem>>, vector<8x128xf32>
    tpu.vector_store %arg9[%c0_15, %c0_16], %19 {strides = array<i32>} : memref<8x128xf32, #tpu.memory_space<vmem>>, vector<8x128xf32>,
    return
  }
  func.func @transform_0(%arg0: i32) -> (i32, i32) {
    %c0_i32 = arith.constant 0 : i32
    %c0_i32_0 = arith.constant 0 : i32
    %c0_i32_1 = arith.constant 0 : i32
    return %c0_i32, %c0_i32_0 : i32, i32
  }
  func.func @transform_1(%arg0: i32) -> (i32, i32) {
    %c0_i32 = arith.constant 0 : i32
    %c0_i32_0 = arith.constant 0 : i32
    return %arg0, %c0_i32 : i32, i32
  }
  func.func @transform_2(%arg0: i32) -> (i32, i32) {
    %c0_i32 = arith.constant 0 : i32
    %c0_i32_0 = arith.constant 0 : i32
    return %arg0, %c0_i32 : i32, i32
  }
  func.func @transform_3(%arg0: i32) -> (i32, i32) {
    %c0_i32 = arith.constant 0 : i32
    %c0_i32_0 = arith.constant 0 : i32
    return %arg0, %c0_i32 : i32, i32
  }
  func.func @transform_4(%arg0: i32) -> (i32, i32) {
    %c0_i32 = arith.constant 0 : i32
    %c0_i32_0 = arith.constant 0 : i32
    %c0_i32_1 = arith.constant 0 : i32
    return %c0_i32, %c0_i32_0 : i32, i32
  }
  func.func @transform_5(%arg0: i32) -> (i32, i32) {
    %c0_i32 = arith.constant 0 : i32
    %c0_i32_0 = arith.constant 0 : i32
    return %c0_i32, %arg0 : i32, i32
  }
  func.func @transform_6(%arg0: i32) -> (i32, i32) {
    %c0_i32 = arith.constant 0 : i32
    %c0_i32_0 = arith.constant 0 : i32
    return %c0_i32, %arg0 : i32, i32
  }
  func.func @transform_7(%arg0: i32) -> (i32, i32) {
    %c0_i32 = arith.constant 0 : i32
    %c0_i32_0 = arith.constant 0 : i32
    return %c0_i32, %arg0 : i32, i32
  }
  func.func @transform_8(%arg0: i32) -> (i32, i32) {
    %c0_i32 = arith.constant 0 : i32
    %c0_i32_0 = arith.constant 0 : i32
    return %c0_i32, %arg0 : i32, i32
  }
}

</mosaic_0001>

<bundles_post_ra>
// kernel: tpu_custom_call.1
= control target key start
LH: loop header
LB: loop body
LE: loop exit
PB: predicated region body
PF: predicated region fallthrough
CT: control target
= control target key end

     0   :  { %13 = vsyncpa [#allocation3], 0  ;;  %s736_s0 = inlined_call_operand.hbm [shape: f32[8,128], index: 0, kind: input, shape index: {}]   ;;  %s737_s1 = inlined_call_operand.vmem [shape: bf16[128,128], index: 1, kind: input, shape index: {}]   ;;  %s738_s2 = inlined_call_operand.vmem [shape: bf16[128,128], index: 2, kind: input, shape index: {}]   ;;  %s739_s3 = inlined_call_operand.vmem [shape: f32[128,1], index: 3, kind: input, shape index: {}]   ;;  %s740_s4 = inlined_call_operand.vmem [shape: f32[1,128], index: 4, kind: input, shape index: {}]   ;;  %s741_s5 = inlined_call_operand.vmem [shape: f32[1,128], index: 5, kind: input, shape index: {}]   ;;  %s742_s6 = inlined_call_operand.vmem [shape: f32[1,128], index: 6, kind: input, shape index: {}]   ;;  %s743_s7 = inlined_call_operand.vmem [shape: f32[1,128], index: 7, kind: input, shape index: {}]   ;;  %s744_s8 = inlined_call_operand.hbm [shape: f32[8,128], index: 8, kind: output, shape index: {}]  }
   0x1   :  { %14 = vsyncpa [#allocation4], 0  ;;  %s537_s27 = smov [#allocation2]  }
   0x2   :  { %s21_s28 = sshll.u32 %s537_s27, 4  ;;  %s22_s28 = int_to_ptr.vmem [resolvable:$true] %s21_s28 }
   0x3   :  { %s501_s29 = scalar_lea.vmem %s22_s28, 128  ;;  %p506_p1 = scmp.lt.s32.totalorder %s22_s28, %s22_s28 }
   0x4   :  { %p502_p0 = scmp.ne.s32.totalorder %s22_s28, %s501_s29  ;;  %p507_p2 = scmp.lt.s32.totalorder %s501_s29, %s501_s29 }
   0x6   :  { %p508_p3 = por %p507_p2, %p506_p1 }
   0x8   :  { %p509_p4 = pnand %p508_p3, %p502_p0 }
   0xa   :  { %512 = shalt.err (!%p509_p4)
}
   0xb   :  { %24 = dma.hbm_to_vmem [thread:$0]  %s736_s0, 128, %s22_s28, [#allocation3]  }
   0xc   :  { %533 = dma.done.wait [#allocation3], 128  }
   0xd   :  { %534 = vsyncadd [#allocation3], 4294967168  ;;  %v538_v0 = vmov 0   ;;  %v58_v1 = vld [vmem:[%s739_s3 + $0x78] sm:$0xff]  ;;  %v56_v2 = vld [vmem:[%s739_s3 + $0x68] sm:$0xff]  ;;  %v539_v5 = vmov 0.0  }
   0xe   :  { %492 = vset.pattern.permute.xlu1 %v538_v0  ;;  %491 = vset.pattern.permute.xlu0 %v538_v0  ;;  %v57_v3 = vld [vmem:[%s739_s3 + $0x70] sm:$0xff]  ;;  %v55_v4 = vld [vmem:[%s739_s3 + $0x60] sm:$0xff]  ;;  %v54_v6 = vld [vmem:[%s739_s3 + $0x58] sm:$0xff]  ;;  %vm540_vm0 = vmmov 0   ;;  %s541_s29 = smov [#allocation5]  }
   0xf   :  { %137 = vperm.xlu0 %491, %v58_v1   ;;  %127 = vperm.xlu1 %492, %v56_v2   ;;  %v53_v7 = vld [vmem:[%s739_s3 + $0x50] sm:$0xff]  ;;  %v52_v8 = vld [vmem:[%s739_s3 + $0x48] sm:$0xff]  ;;  %v51_v9 = vld [vmem:[%s739_s3 + $0x40] sm:$0xff]  ;;  %s346_s30 = sshll.u32 %s541_s29, 4  ;;  %s347_s30 = int_to_ptr.vmem [resolvable:$true] %s346_s30 }
  0x10   :  { %451 = vmatprep.subr.mxu0 %v539_v5  ;;  %v50_v10 = vld [vmem:[%s739_s3 + $0x38] sm:$0xff]  ;;  %v49_v11 = vld [vmem:[%s739_s3 + $0x30] sm:$0xff]  ;;  %v48_v12 = vld [vmem:[%s739_s3 + $0x28] sm:$0xff]  ;;  %483 = vmatprep.mubr.msk.f32.mxu0 %vm540_vm0, %v539_v5  ;;  %p518_p6 = scmp.lt.s32.totalorder %s347_s30, %s347_s30 }
  0x11   :  { %v47_v13 = vld [vmem:[%s739_s3 + $0x20] sm:$0xff]  ;;  %v46_v14 = vld [vmem:[%s739_s3 + $0x18] sm:$0xff]  ;;  %v45_v15 = vld [vmem:[%s739_s3 + $0x10] sm:$0xff] }
  0x12   :  { %v44_v16 = vld [vmem:[%s739_s3 + $0x8] sm:$0xff]  ;;  %v43_v17 = vld [vmem:[%s739_s3] sm:$0xff]  ;;  %v433_v18 = vld [vmem:[%s738_s2 + $0x38] sm:$0xff]  }
  0x13   :  { %132 = vperm.xlu0 %491, %v57_v3   ;;  %122 = vperm.xlu1 %492, %v55_v4   ;;  %v646_v19 = vld [vmem:[%s740_s4] ss:$0 sm:$0xff]  ;;  %v426_v20 = vld [vmem:[%s737_s1 + $0x38] sm:$0xff]   ;;  %v419_v21 = vunpack.c.h.bf16 %v433_v18  ;;  %v432_v23 = vld [vmem:[%s738_s2 + $0x30] sm:$0xff]   ;;  %v418_v30 = vunpack.c.l.bf16 %v433_v18 }
  0x14   :  { %v387_v25 = vunpack.c.h.bf16 %v426_v20  ;;  %v415_v28 = vunpack.c.h.bf16 %v432_v23  ;;  %v425_v32 = vld [vmem:[%s737_s1 + $0x30] sm:$0xff]   ;;  %v386_v34 = vunpack.c.l.bf16 %v426_v20  ;;  %v414_v40 = vunpack.c.l.bf16 %v432_v23  ;;  %v431_v43 = vld [vmem:[%s738_s2 + $0x28] sm:$0xff]   ;;  %v430_v55 = vld [vmem:[%s738_s2 + $0x20] sm:$0xff]  }
  0x15   :  { %v383_v38 = vunpack.c.h.bf16 %v425_v32  ;;  %v411_v47 = vunpack.c.h.bf16 %v431_v43  ;;  %v382_v49 = vunpack.c.l.bf16 %v425_v32  ;;  %v424_v51 = vld [vmem:[%s737_s1 + $0x28] sm:$0xff]   ;;  %v410_v52 = vunpack.c.l.bf16 %v431_v43  ;;  %v423_v1 = vld [vmem:[%s737_s1 + $0x20] sm:$0xff]   ;;  %v428_v23 = vld [vmem:[%s738_s2 + $0x10] sm:$0xff]  }
  0x16   :  { %v379_v57 = vunpack.c.h.bf16 %v424_v51  ;;  %v407_v59 = vunpack.c.h.bf16 %v430_v55  ;;  %v378_v63 = vunpack.c.l.bf16 %v424_v51  ;;  %v406_v2 = vunpack.c.l.bf16 %v430_v55  ;;  %v389_v51 = vld [vmem:[%s738_s2] sm:$0xff]  }
  0x17   :  { %117 = vperm.xlu0 %491, %v54_v6   ;;  %112 = vperm.xlu1 %492, %v53_v7   ;;  %v375_v7 = vunpack.c.h.bf16 %v423_v1  ;;  %v398_v32 = vunpack.c.l.bf16 %v428_v23  ;;  %v391_v55 = vunpack.c.h.bf16 %v389_v51 }
  0x1b   :  { %107 = vperm.xlu0 %491, %v52_v8   ;;  %102 = vperm.xlu1 %492, %v51_v9   ;;  %v429_v8 = vld [vmem:[%s738_s2 + $0x18] sm:$0xff]  }
  0x1f   :  { %97 = vperm.xlu0 %491, %v50_v10   ;;  %92 = vperm.xlu1 %492, %v49_v11   ;;  %v374_v10 = vunpack.c.l.bf16 %v423_v1 }
  0x23   :  { %87 = vperm.xlu0 %491, %v48_v12   ;;  %82 = vperm.xlu1 %492, %v47_v13   ;;  %v403_v12 = vunpack.c.h.bf16 %v429_v8 }
  0x27   :  { %77 = vperm.xlu0 %491, %v46_v14   ;;  %72 = vperm.xlu1 %492, %v45_v15  }
  0x2b   :  { %67 = vperm.xlu0 %491, %v44_v16   ;;  %62 = vperm.xlu1 %492, %v43_v17   ;;  %v422_v16 = vld [vmem:[%s737_s1 + $0x18] sm:$0xff]   ;;  %v402_v17 = vunpack.c.l.bf16 %v429_v8  ;;  %v260_v8 = vld [vmem:[%s743_s7] sm:$0x1] }
  0x8a   :  { %v138_v22 = vpop.permute.xlu0 %137  ;;  %v128_v26 = vpop.permute.xlu1 %127 }
  0x8b   :  { %v161_v24 = vmul.f32 %v646_v19, %v138_v22  ;;  %v159_v29 = vmul.f32 %v646_v19, %v128_v26  ;;  %v371_v22 = vunpack.c.h.bf16 %v422_v16 }
  0x8d   :  { %v241_v27 = vmul.f32 %v419_v21, %v161_v24  ;;  %v239_v36 = vmul.f32 %v415_v28, %v159_v29 }
  0x8e   :  { %v133_v31 = vpop.permute.xlu0 %132  ;;  %v123_v39 = vpop.permute.xlu1 %122 }
  0x8f   :  { %v160_v33 = vmul.f32 %v646_v19, %v133_v31  ;;  %v257_v35 = vadd.f32 %v387_v25, %v241_v27  ;;  %v158_v41 = vmul.f32 %v646_v19, %v123_v39  ;;  %v255_v45 = vadd.f32 %v383_v38, %v239_v36  ;;  %v421_v31 = vld [vmem:[%s737_s1 + $0x10] sm:$0xff]  }
  0x90   :  { %v370_v25 = vunpack.c.l.bf16 %v422_v16  ;;  %v399_v27 = vunpack.c.h.bf16 %v428_v23  ;;  %v367_v36 = vunpack.c.h.bf16 %v421_v31  ;;  %v366_v39 = vunpack.c.l.bf16 %v421_v31 }
  0x91   :  { %v240_v37 = vmul.f32 %v418_v30, %v160_v33  ;;  %452 = vmatpush3.xpose.msra.mxu0 %v257_v35  ;;  %v238_v46 = vmul.f32 %v414_v40, %v158_v41 }
  0x92   :  { %453 = vmatprep.subr.mxu0 %v539_v5  ;;  %v118_v44 = vpop.permute.xlu0 %117  ;;  %v113_v50 = vpop.permute.xlu1 %112 }
  0x93   :  { %v256_v42 = vadd.f32 %v386_v34, %v240_v37  ;;  %v157_v48 = vmul.f32 %v646_v19, %v118_v44  ;;  %v156_v54 = vmul.f32 %v646_v19, %v113_v50  ;;  %v254_v56 = vadd.f32 %v382_v49, %v238_v46  ;;  %v427_v37 = vld [vmem:[%s738_s2 + $0x8] sm:$0xff]  }
  0x94   :  { %v395_v41 = vunpack.c.h.bf16 %v427_v37  ;;  %v394_v46 = vunpack.c.l.bf16 %v427_v37 }
  0x95   :  { %454 = vmatpush3.xpose.msra.mxu0 %v256_v42  ;;  %v237_v53 = vmul.f32 %v411_v47, %v157_v48  ;;  %v236_v60 = vmul.f32 %v410_v52, %v156_v54 }
  0x96   :  { %455 = vmatprep.subr.mxu0 %v539_v5  ;;  %v108_v58 = vpop.permute.xlu0 %107  ;;  %v103_v0 = vpop.permute.xlu1 %102 }
  0x97   :  { %v155_v61 = vmul.f32 %v646_v19, %v108_v58  ;;  %v253_v62 = vadd.f32 %v379_v57, %v237_v53  ;;  %v154_v4 = vmul.f32 %v646_v19, %v103_v0  ;;  %v252_v6 = vadd.f32 %v378_v63, %v236_v60 }
  0x98   :  { %v390_v60 = vunpack.c.l.bf16 %v389_v51 }
  0x99   :  { %456 = vmatpush3.xpose.msra.mxu0 %v255_v45  ;;  %v235_v3 = vmul.f32 %v407_v59, %v155_v61  ;;  %v234_v11 = vmul.f32 %v406_v2, %v154_v4  ;;  %v420_v45 = vld [vmem:[%s737_s1 + $0x8] sm:$0xff]   ;;  %v357_v59 = vld [vmem:[%s737_s1] sm:$0xff]  }
  0x9a   :  { %457 = vmatprep.subr.mxu0 %v539_v5  ;;  %v98_v9 = vpop.permute.xlu0 %97  ;;  %v93_v15 = vpop.permute.xlu1 %92  ;;  %v363_v50 = vunpack.c.h.bf16 %v420_v45  ;;  %v362_v53 = vunpack.c.l.bf16 %v420_v45  ;;  %v359_v0 = vunpack.c.h.bf16 %v357_v59 }
  0x9b   :  { %v153_v13 = vmul.f32 %v646_v19, %v98_v9  ;;  %v251_v14 = vadd.f32 %v375_v7, %v235_v3  ;;  %v152_v20 = vmul.f32 %v646_v19, %v93_v15  ;;  %v250_v21 = vadd.f32 %v374_v10, %v234_v11  ;;  %v258_v11 = vld [vmem:[%s741_s5] sm:$0x1] }
  0x9c   :  { %v358_v3 = vunpack.c.l.bf16 %v357_v59  ;;  %v264_v7 = vlaneseq }
  0x9d   :  { %458 = vmatpush3.xpose.msra.mxu0 %v254_v56  ;;  %v233_v18 = vmul.f32 %v403_v12, %v153_v13  ;;  %v232_v26 = vmul.f32 %v402_v17, %v152_v20 }
  0x9e   :  { %459 = vmatprep.subr.mxu0 %v539_v5  ;;  %v88_v24 = vpop.permute.xlu0 %87  ;;  %v83_v30 = vpop.permute.xlu1 %82  ;;  %v265_v10 = vshrl.u32 %v264_v7, 7 }
  0x9f   :  { %v151_v28 = vmul.f32 %v646_v19, %v88_v24  ;;  %v249_v29 = vadd.f32 %v371_v22, %v233_v18  ;;  %v150_v34 = vmul.f32 %v646_v19, %v83_v30  ;;  %v248_v35 = vadd.f32 %v370_v25, %v232_v26 }
  0xa0   :  { %v266_v12 = vsub.s32 0, %v265_v10 }
  0xa1   :  { %460 = vmatpush3.xpose.msra.mxu0 %v253_v62  ;;  %v231_v33 = vmul.f32 %v399_v27, %v151_v28  ;;  %v230_v40 = vmul.f32 %v398_v32, %v150_v34 }
  0xa2   :  { %461 = vmatprep.subr.mxu0 %v539_v5  ;;  %v78_v38 = vpop.permute.xlu0 %77  ;;  %v73_v44 = vpop.permute.xlu1 %72 }
  0xa3   :  { %v149_v42 = vmul.f32 %v646_v19, %v78_v38  ;;  %v247_v43 = vadd.f32 %v367_v36, %v231_v33  ;;  %v148_v48 = vmul.f32 %v646_v19, %v73_v44  ;;  %v246_v49 = vadd.f32 %v366_v39, %v230_v40 }
  0xa5   :  { %462 = vmatpush3.xpose.msra.mxu0 %v252_v6  ;;  %v229_v47 = vmul.f32 %v395_v41, %v149_v42  ;;  %v228_v54 = vmul.f32 %v394_v46, %v148_v48  ;;  %v42_v6 = vld [vmem:[#allocation2] sm:$0xff] }
  0xa6   :  { %463 = vmatprep.subr.mxu0 %v539_v5  ;;  %v68_v52 = vpop.permute.xlu0 %67  ;;  %v63_v58 = vpop.permute.xlu1 %62 }
  0xa7   :  { %v147_v56 = vmul.f32 %v646_v19, %v68_v52  ;;  %v245_v57 = vadd.f32 %v363_v50, %v229_v47  ;;  %v146_v62 = vmul.f32 %v646_v19, %v63_v58  ;;  %v244_v63 = vadd.f32 %v362_v53, %v228_v54  ;;  %v259_v19 = vld [vmem:[%s742_s6] sm:$0x1]  ;;  %s513_s6 = scalar_lea.vmem %s347_s30, 128 }
  0xa8   :  { %v261_v9 = vmul.f32 %v260_v8, %v259_v19  ;;  %p514_p5 = scmp.ne.s32.totalorder %s347_s30, %s513_s6  ;;  %p519_p7 = scmp.lt.s32.totalorder %s513_s6, %s513_s6 }
  0xa9   :  { %464 = vmatpush3.xpose.msra.mxu0 %v251_v14  ;;  %v227_v61 = vmul.f32 %v391_v55, %v147_v56  ;;  %v226_v1 = vmul.f32 %v390_v60, %v146_v62 }
  0xaa   :  { %465 = vmatprep.subr.mxu0 %v539_v5  ;;  %p520_p8 = por %p519_p7, %p518_p6 }
  0xab   :  { %v243_v2 = vadd.f32 %v359_v0, %v227_v61  ;;  %v242_v4 = vadd.f32 %v358_v3, %v226_v1 }
  0xac   :  { %p521_p9 = pnand %p520_p8, %p514_p5 }
  0xad   :  { %466 = vmatpush3.xpose.msra.mxu0 %v250_v21 }
  0xae   :  { %467 = vmatprep.subr.mxu0 %v539_v5 }
  0xb1   :  { %468 = vmatpush3.xpose.msra.mxu0 %v249_v29 }
  0xb2   :  { %469 = vmatprep.subr.mxu0 %v539_v5 }
  0xb5   :  { %470 = vmatpush3.xpose.msra.mxu0 %v248_v35 }
  0xb6   :  { %471 = vmatprep.subr.mxu0 %v539_v5 }
  0xb9   :  { %472 = vmatpush3.xpose.msra.mxu0 %v247_v43 }
  0xba   :  { %473 = vmatprep.subr.mxu0 %v539_v5 }
  0xbd   :  { %474 = vmatpush3.xpose.msra.mxu0 %v246_v49 }
  0xbe   :  { %475 = vmatprep.subr.mxu0 %v539_v5 }
  0xc1   :  { %476 = vmatpush3.xpose.msra.mxu0 %v245_v57 }
  0xc2   :  { %477 = vmatprep.subr.mxu0 %v539_v5 }
  0xc5   :  { %478 = vmatpush3.xpose.msra.mxu0 %v244_v63 }
  0xc6   :  { %479 = vmatprep.subr.mxu0 %v539_v5 }
  0xc9   :  { %480 = vmatpush3.xpose.msra.mxu0 %v243_v2 }
  0xca   :  { %481 = vmatprep.subr.mxu0 %v539_v5  ;;  %v262_v5 = vadd.f32 %v261_v9, %v258_v11 }
  0xcc   :  { %v267_v13 = vrot.slane %v262_v5, %v266_v12 }
  0xcd   :  { %482 = vmatpush3.xpose.msra.mxu0 %v242_v4 }
  0xd0   :  { %484 = vmatmul.mubr.f32.vlgmr.msra.gmra.mxu0 %v42_v6 }
 0x190   :  { %v335_v14 = vpop.f32.mrf.mxu0 }
 0x191   :  { %v336_v15 = vadd.f32 %v335_v14, %v267_v13 }
 0x192   :  { %v485_v16 = vpop.f32.mrf.mxu0 }
 0x193   :  { %339 = vst [vmem:[#allocation5] sm:$0xff] %v336_v15 }
 0x194   :  { %524 = shalt.err (!%p521_p9)
}
 0x195   :  { %349 = dma.vmem_to_hbm [thread:$0]  %s347_s30, 128, %s744_s8, [#allocation4]  }
 0x196   :  { %535 = dma.done.wait [#allocation4], 128  }
 0x197   :  { %536 = vsyncadd [#allocation4], 4294967168 }
 0x198   :  { %353 = vsyncpa [#allocation3], 1 }
 0x199   :  { %354 = vsyncpa [#allocation4], 1 }

</bundles_post_ra>
